<compile_context>
chip_gen: v7x
topology: tpu7x:2x2x1
jax: 0.10.0
libtpu: 0.0.40
codegen_flags: <defaults>
</compile_context>

<pallas_src>
import jax
import jax.numpy as jnp
from jax import lax
from jax.experimental import pallas as pl
from jax.experimental.pallas import tpu as pltpu

_LANE = 128
_SUBLANE = 8


def _round_up(x, m):
    return ((x + m - 1) // m) * m


def _gelu_exact(x):
    # PyTorch F.gelu default (approximate='none'): 0.5 * x * (1 + erf(x / sqrt(2)))
    return 0.5 * x * (1.0 + lax.erf(x * jnp.float32(0.7071067811865476)))


def _make_actor_kernel(fc1_dim, fc2_dim, a_pad):
    def kernel(x_ref, w1_ref, w2_ref, wa_ref, bias_ref, out_ref):
        x = x_ref[...]
        b1 = bias_ref[0:1, 0:fc1_dim]          # static slices into the packed bias slab
        b2 = bias_ref[1:2, 0:fc2_dim]
        ba = bias_ref[2:3, 0:a_pad]

        h1 = _gelu_exact(
            jnp.dot(x, w1_ref[...], preferred_element_type=jnp.float32) + b1)
        h2 = _gelu_exact(
            jnp.dot(h1, w2_ref[...], preferred_element_type=jnp.float32) + b2)
        out = jnp.dot(h2, wa_ref[...], preferred_element_type=jnp.float32) + ba
        out_ref[...] = out.astype(out_ref.dtype)

    return kernel


def prepare_params(params):
    """One-time (per parameter update) prep: lane-pad the action head and pack
    the three tiny bias vectors into a single VMEM slab.  Keeps the hot
    forward path free of any per-call HBM-touching parameter ops."""
    w1, b1 = params["w1"], params["b1"]
    w2, b2 = params["w2"], params["b2"]
    wa, ba = params["wa"], params["ba"]

    in_dim, fc1_dim = w1.shape
    fc2_dim = w2.shape[1]
    action_dim = wa.shape[1]

    # Lane-dense action head: pad the output dim to a multiple of 128 lanes.
    a_pad = _round_up(max(action_dim, _LANE), _LANE)
    wa_p = jnp.zeros((fc2_dim, a_pad), jnp.float32).at[:, :action_dim].set(wa)
    ba_p = jnp.zeros((a_pad,), jnp.float32).at[:action_dim].set(ba.reshape(-1))

    # Pack biases into one slab -> one resident DMA stream instead of three.
    bcols = _round_up(max(fc1_dim, fc2_dim, a_pad), _LANE)
    bias_pack = jnp.zeros((3, bcols), jnp.float32)
    bias_pack = bias_pack.at[0, :fc1_dim].set(b1.reshape(-1))
    bias_pack = bias_pack.at[1, :fc2_dim].set(b2.reshape(-1))
    bias_pack = bias_pack.at[2, :a_pad].set(ba_p)

    return dict(
        w1=jnp.asarray(w1, jnp.float32),
        w2=jnp.asarray(w2, jnp.float32),
        wa_p=wa_p,
        bias_pack=bias_pack,
        # static metadata (python ints)
        in_dim=in_dim, fc1_dim=fc1_dim, fc2_dim=fc2_dim,
        action_dim=action_dim, a_pad=a_pad, bcols=bcols,
    )


def _choose_tile(batch, max_tile_b):
    """Pick the batch tile: big tiles for DMA efficiency, but >=2 grid steps
    when the batch allows it (v7x megacore), and no pathological padding when
    B is just above the tile size."""
    if batch <= _SUBLANE:
        return batch                      # block == full array extent (allowed)
    n_steps = max(pl.cdiv(batch, max_tile_b), 2 if batch >= 2 * _SUBLANE else 1)
    tile = _round_up(pl.cdiv(batch, n_steps), _SUBLANE)
    return min(tile, max_tile_b)


def actor_forward(state, prep, *, max_tile_b=2048):
    """Hot path: exactly one launched op (the pallas_call)."""
    w1, w2, wa_p, bias_pack = prep["w1"], prep["w2"], prep["wa_p"], prep["bias_pack"]
    in_dim, fc1_dim, fc2_dim = prep["in_dim"], prep["fc1_dim"], prep["fc2_dim"]
    action_dim, a_pad, bcols = prep["action_dim"], prep["a_pad"], prep["bcols"]

    B = state.shape[0]
    tile_b = _choose_tile(B, max_tile_b)
    grid = (pl.cdiv(B, tile_b),)          # partial last block: no input copy-pad

    # Advisory cost estimate for XLA scheduling around the custom call.
    flops = 2 * B * (in_dim * fc1_dim + fc1_dim * fc2_dim + fc2_dim * a_pad)
    bytes_accessed = (state.nbytes + w1.nbytes + w2.nbytes + wa_p.nbytes
                      + bias_pack.nbytes + B * a_pad * 4)

    # Explicit VMEM budget so large tiles never trip v5e's 16 MiB scoped default.
    lane_in = _round_up(in_dim, _LANE)
    vmem_need = (2 * tile_b * lane_in * 4          # x, double-buffered (lane-padded)
                 + 2 * tile_b * a_pad * 4          # out, double-buffered
                 + 2 * tile_b * _LANE * 4          # h1/h2 staging headroom
                 + 2 * (w1.nbytes + w2.nbytes + wa_p.nbytes + bias_pack.nbytes)
                 + (4 << 20))                      # slack
    vmem_limit = int(min(max(vmem_need, 16 << 20), 48 << 20))

    out = pl.pallas_call(
        _make_actor_kernel(fc1_dim, fc2_dim, a_pad),
        out_shape=jax.ShapeDtypeStruct((B, a_pad), jnp.float32),
        grid_spec=pltpu.PrefetchScalarGridSpec(
            num_scalar_prefetch=0,
            grid=grid,
            in_specs=[
                pl.BlockSpec((tile_b, in_dim), lambda i: (i, 0)),    # x: tiled rows
                pl.BlockSpec((in_dim, fc1_dim), lambda i: (0, 0)),   # W1: resident
                pl.BlockSpec((fc1_dim, fc2_dim), lambda i: (0, 0)),  # W2: resident
                pl.BlockSpec((fc2_dim, a_pad), lambda i: (0, 0)),    # Wa: resident
                pl.BlockSpec((3, bcols), lambda i: (0, 0)),          # packed biases
            ],
            out_specs=pl.BlockSpec((tile_b, a_pad), lambda i: (i, 0)),
        ),
        compiler_params=pltpu.CompilerParams(
            dimension_semantics=("parallel",),
            vmem_limit_bytes=vmem_limit,
        ),
        cost_estimate=pl.CostEstimate(
            flops=flops,
            transcendentals=B * (fc1_dim + fc2_dim),
            bytes_accessed=bytes_accessed,
        ),
    )(state, w1, w2, wa_p, bias_pack)

    # TODO(synk): at training-scale batches, fuse the consumer of `action` so
    # the 128-lane padded slab never hits HBM (padded writeback dominates there).
    return out[:, :action_dim]


def init_params(key, state_dim, action_dim, fc1_dim, fc2_dim):
    # PyTorch nn.Linear default init: U(-1/sqrt(fan_in), 1/sqrt(fan_in)).
    # Weights stored (in_features, out_features) so the kernel computes x @ W.
    ks = jax.random.split(key, 6)

    def lin(kw, kb, fan_in, fan_out):
        bound = float(1.0 / (fan_in ** 0.5))
        w = jax.random.uniform(kw, (fan_in, fan_out), jnp.float32, -bound, bound)
        b = jax.random.uniform(kb, (fan_out,), jnp.float32, -bound, bound)
        return w, b

    w1, b1 = lin(ks[0], ks[1], state_dim, fc1_dim)
    w2, b2 = lin(ks[2], ks[3], fc1_dim, fc2_dim)
    wa, ba = lin(ks[4], ks[5], fc2_dim, action_dim)
    # fc3 / fc4 / ln1 / ln2 are defined on the PyTorch module but unused in forward().
    return dict(w1=w1, b1=b1, w2=w2, b2=b2, wa=wa, ba=ba)


def reference_forward(state, params):
    # Plain-JAX reference for correctness check.
    h1 = jax.nn.gelu(state @ params["w1"] + params["b1"], approximate=False)
    h2 = jax.nn.gelu(h1 @ params["w2"] + params["b2"], approximate=False)
    return h2 @ params["wa"] + params["ba"]


if __name__ == "__main__":
    # Small shapes consistent with the module.
    state_dim, action_dim = 12, 5
    fc1_dim, fc2_dim = 64, 64
    batch = 8

    key = jax.random.PRNGKey(0)
    kp, kx = jax.random.split(key)
    params = init_params(kp, state_dim, action_dim, fc1_dim, fc2_dim)
    state = jax.random.normal(kx, (batch, state_dim), jnp.float32)

    prep = prepare_params(params)              # one-time parameter prep
    jax.block_until_ready(prep["wa_p"])

    action = actor_forward(state, prep)
    jax.block_until_ready(action)

    ref = reference_forward(state, params)
    assert action.shape == (batch, action_dim)
    assert jnp.allclose(action, ref, atol=1e-4, rtol=1e-4)

    # Exercise a non-divisible, multi-step grid too (partial last block path).
    state_big = jax.random.normal(jax.random.PRNGKey(1), (37, state_dim), jnp.float32)
    action_big = actor_forward(state_big, prep)
    jax.block_until_ready(action_big)
    assert jnp.allclose(action_big, reference_forward(state_big, params),
                        atol=1e-4, rtol=1e-4)

    print("KERNEL_OK")
</pallas_src>

<mosaic_0001>
module attributes {stable_mosaic.version = 11 : i64} {
  func.func @kernel(%arg0: i32, %arg1: memref<8x12xf32, #tpu.memory_space<vmem>>, %arg2: memref<12x64xf32, #tpu.memory_space<vmem>>, %arg3: memref<64x64xf32, #tpu.memory_space<vmem>>, %arg4: memref<64x128xf32, #tpu.memory_space<vmem>>, %arg5: memref<3x128xf32, #tpu.memory_space<vmem>>, %arg6: memref<8x128xf32, #tpu.memory_space<vmem>>) attributes {dimension_semantics = [#tpu.dimension_semantics<parallel>], iteration_bounds = array<i64: 1>, scalar_prefetch = 0 : i64, scratch_operands = 0 : i64, tpu.core_type = #tpu.core_type<tc>, window_params = [{transform_indices = @transform_0, window_bounds = array<i64: 8, 12>}, {pipeline_mode = #tpu.pipeline_mode<synchronous>, transform_indices = @transform_1, window_bounds = array<i64: 12, 64>}, {pipeline_mode = #tpu.pipeline_mode<synchronous>, transform_indices = @transform_2, window_bounds = array<i64: 64, 64>}, {pipeline_mode = #tpu.pipeline_mode<synchronous>, transform_indices = @transform_3, window_bounds = array<i64: 64, 128>}, {pipeline_mode = #tpu.pipeline_mode<synchronous>, transform_indices = @transform_4, window_bounds = array<i64: 3, 128>}, {transform_indices = @transform_5, window_bounds = array<i64: 8, 128>}]} {
    %c0 = arith.constant 0 : index
    %c0_0 = arith.constant 0 : index
    %0 = vector.load %arg1[%c0, %c0_0] : memref<8x12xf32, #tpu.memory_space<vmem>>, vector<8x12xf32>
    %c0_1 = arith.constant 0 : index
    %c0_2 = arith.constant 0 : index
    %1 = vector.load %arg5[%c0_1, %c0_2] : memref<3x128xf32, #tpu.memory_space<vmem>>, vector<1x64xf32>
    %c1 = arith.constant 1 : index
    %c0_3 = arith.constant 0 : index
    %2 = vector.load %arg5[%c1, %c0_3] : memref<3x128xf32, #tpu.memory_space<vmem>>, vector<1x64xf32>
    %c2 = arith.constant 2 : index
    %c0_4 = arith.constant 0 : index
    %3 = vector.load %arg5[%c2, %c0_4] : memref<3x128xf32, #tpu.memory_space<vmem>>, vector<1x128xf32>
    %c0_5 = arith.constant 0 : index
    %c0_6 = arith.constant 0 : index
    %4 = vector.load %arg2[%c0_5, %c0_6] : memref<12x64xf32, #tpu.memory_space<vmem>>, vector<12x64xf32>
    %cst = arith.constant dense<0.000000e+00> : vector<8x64xf32>
    %5 = tpu.matmul %0, %4, %cst {dimension_numbers = #tpu.dot_dimension_numbers<[1], [0], [0], [1], [0, 0, 1, 1], [], []>} : vector<8x12xf32>, vector<12x64xf32>, vector<8x64xf32> -> vector<8x64xf32>
    %6 = vector.broadcast %1 : vector<1x64xf32> to vector<8x64xf32>
    %7 = arith.addf %5, %6 : vector<8x64xf32>
    %cst_7 = arith.constant 5.000000e-01 : f32
    %8 = vector.broadcast %cst_7 : f32 to vector<8x64xf32>
    %9 = arith.mulf %8, %7 : vector<8x64xf32>
    %cst_8 = arith.constant 0.707106769 : f32
    %10 = vector.broadcast %cst_8 : f32 to vector<8x64xf32>
    %11 = arith.mulf %7, %10 : vector<8x64xf32>
    %12 = math.erf %11 : vector<8x64xf32>
    %cst_9 = arith.constant 1.000000e+00 : f32
    %13 = vector.broadcast %cst_9 : f32 to vector<8x64xf32>
    %14 = arith.addf %13, %12 : vector<8x64xf32>
    %15 = arith.mulf %9, %14 : vector<8x64xf32>
    %c0_10 = arith.constant 0 : index
    %c0_11 = arith.constant 0 : index
    %16 = vector.load %arg3[%c0_10, %c0_11] : memref<64x64xf32, #tpu.memory_space<vmem>>, vector<64x64xf32>
    %cst_12 = arith.constant dense<0.000000e+00> : vector<8x64xf32>
    %17 = tpu.matmul %15, %16, %cst_12 {dimension_numbers = #tpu.dot_dimension_numbers<[1], [0], [0], [1], [0, 0, 1, 1], [], []>} : vector<8x64xf32>, vector<64x64xf32>, vector<8x64xf32> -> vector<8x64xf32>
    %18 = vector.broadcast %2 : vector<1x64xf32> to vector<8x64xf32>
    %19 = arith.addf %17, %18 : vector<8x64xf32>
    %cst_13 = arith.constant 5.000000e-01 : f32
    %20 = vector.broadcast %cst_13 : f32 to vector<8x64xf32>
    %21 = arith.mulf %20, %19 : vector<8x64xf32>
    %cst_14 = arith.constant 0.707106769 : f32
    %22 = vector.broadcast %cst_14 : f32 to vector<8x64xf32>
    %23 = arith.mulf %19, %22 : vector<8x64xf32>
    %24 = math.erf %23 : vector<8x64xf32>
    %cst_15 = arith.constant 1.000000e+00 : f32
    %25 = vector.broadcast %cst_15 : f32 to vector<8x64xf32>
    %26 = arith.addf %25, %24 : vector<8x64xf32>
    %27 = arith.mulf %21, %26 : vector<8x64xf32>
    %c0_16 = arith.constant 0 : index
    %c0_17 = arith.constant 0 : index
    %28 = vector.load %arg4[%c0_16, %c0_17] : memref<64x128xf32, #tpu.memory_space<vmem>>, vector<64x128xf32>
    %cst_18 = arith.constant dense<0.000000e+00> : vector<8x128xf32>
    %29 = tpu.matmul %27, %28, %cst_18 {dimension_numbers = #tpu.dot_dimension_numbers<[1], [0], [0], [1], [0, 0, 1, 1], [], []>} : vector<8x64xf32>, vector<64x128xf32>, vector<8x128xf32> -> vector<8x128xf32>
    %30 = vector.broadcast %3 : vector<1x128xf32> to vector<8x128xf32>
    %31 = arith.addf %29, %30 : vector<8x128xf32>
    %c0_19 = arith.constant 0 : index
    %c0_20 = arith.constant 0 : index
    %32 = vector.load %arg6[%c0_19, %c0_20] : memref<8x128xf32, #tpu.memory_space<vmem>>, vector<8x128xf32>
    tpu.vector_store %arg6[%c0_19, %c0_20], %31 {strides = array<i32>} : memref<8x128xf32, #tpu.memory_space<vmem>>, vector<8x128xf32>,
    return
  }
  func.func @transform_0(%arg0: i32) -> (i32, i32) {
    %c0_i32 = arith.constant 0 : i32
    %c0_i32_0 = arith.constant 0 : i32
    return %arg0, %c0_i32 : i32, i32
  }
  func.func @transform_1(%arg0: i32) -> (i32, i32) {
    %c0_i32 = arith.constant 0 : i32
    %c0_i32_0 = arith.constant 0 : i32
    %c0_i32_1 = arith.constant 0 : i32
    return %c0_i32, %c0_i32_0 : i32, i32
  }
  func.func @transform_2(%arg0: i32) -> (i32, i32) {
    %c0_i32 = arith.constant 0 : i32
    %c0_i32_0 = arith.constant 0 : i32
    %c0_i32_1 = arith.constant 0 : i32
    return %c0_i32, %c0_i32_0 : i32, i32
  }
  func.func @transform_3(%arg0: i32) -> (i32, i32) {
    %c0_i32 = arith.constant 0 : i32
    %c0_i32_0 = arith.constant 0 : i32
    %c0_i32_1 = arith.constant 0 : i32
    return %c0_i32, %c0_i32_0 : i32, i32
  }
  func.func @transform_4(%arg0: i32) -> (i32, i32) {
    %c0_i32 = arith.constant 0 : i32
    %c0_i32_0 = arith.constant 0 : i32
    %c0_i32_1 = arith.constant 0 : i32
    return %c0_i32, %c0_i32_0 : i32, i32
  }
  func.func @transform_5(%arg0: i32) -> (i32, i32) {
    %c0_i32 = arith.constant 0 : i32
    %c0_i32_0 = arith.constant 0 : i32
    return %arg0, %c0_i32 : i32, i32
  }
}

</mosaic_0001>

<bundles_post_ra>
// kernel: tpu_custom_call.1
= control target key start
LH: loop header
LB: loop body
LE: loop exit
PB: predicated region body
PF: predicated region fallthrough
CT: control target
= control target key end

     0   :  { %10 = vsyncpa [#allocation3], 0  ;;  %s725_s0 = inlined_call_operand.hbm [shape: f32[8,12], index: 0, kind: input, shape index: {}]   ;;  %s726_s1 = inlined_call_operand.hbm [shape: f32[12,64], index: 1, kind: input, shape index: {}]   ;;  %s727_s2 = inlined_call_operand.hbm [shape: f32[64,64], index: 2, kind: input, shape index: {}]   ;;  %s728_s3 = inlined_call_operand.hbm [shape: f32[64,128], index: 3, kind: input, shape index: {}]   ;;  %s729_s4 = inlined_call_operand.vmem [shape: f32[3,128], index: 4, kind: input, shape index: {}]   ;;  %s730_s5 = inlined_call_operand.hbm [shape: f32[8,128], index: 5, kind: output, shape index: {}]  }
   0x1   :  { %11 = vsyncpa [#allocation6], 0 }
   0x2   :  { %12 = vsyncpa [#allocation9], 0 }
   0x3   :  { %13 = vsyncpa [#allocation4], 0  ;;  %s595_s18 = smov [#allocation5]   ;;  %s477_s22 = scalar_lea.hbm %s726_s1, 256 }
   0x4   :  { %s29_s19 = sshll.u32 %s595_s18, 4  ;;  %p478_p0 = scmp.ne.s32.totalorder %s726_s1, %s477_s22  ;;  %s30_s19 = int_to_ptr.vmem [resolvable:$true] %s29_s19 }
   0x5   :  { %p481_p1 = scmp.lt.u32.totalorder %s477_s22, %s726_s1 }
   0x7   :  { %p483_p2 = pnand %p481_p1, %p478_p0 }
   0x9   :  { %486 = shalt.err (!%p483_p2)
}
   0xa   :  { %s487_s27 = scalar_lea.vmem %s30_s19, 256  ;;  %p492_p4 = scmp.lt.s32.totalorder %s30_s19, %s30_s19 }
   0xb   :  { %p488_p3 = scmp.ne.s32.totalorder %s30_s19, %s487_s27  ;;  %p493_p5 = scmp.lt.s32.totalorder %s487_s27, %s487_s27 }
   0xd   :  { %p494_p6 = por %p493_p5, %p492_p4 }
   0xf   :  { %p495_p7 = pnand %p494_p6, %p488_p3 }
  0x11   :  { %498 = shalt.err (!%p495_p7)
}
  0x12   :  { %s596_s28 = smov 128   ;;  %s597_s29 = smov 8  }
  0x13   :  { %35 = dma.hbm_to_vmem [thread:$0]  %s726_s1, 256, %s30_s19, [#allocation6], %s596_s28, %s596_s28, %s597_s29  }
  0x14   :  { %s598_s7 = smov [#allocation2]   ;;  %s599_s9 = smov [#allocation7]  }
  0x15   :  { %s20_s8 = sshll.u32 %s598_s7, 4  ;;  %s41_s10 = sshll.u32 %s599_s9, 4  ;;  %s21_s8 = int_to_ptr.vmem [resolvable:$true] %s20_s8  ;;  %s42_s10 = int_to_ptr.vmem [resolvable:$true] %s41_s10 }
  0x16   :  { %s499_s13 = scalar_lea.hbm %s725_s0, 128 }
  0x17   :  { %p500_p8 = scmp.ne.s32.totalorder %s725_s0, %s499_s13  ;;  %p503_p9 = scmp.lt.u32.totalorder %s499_s13, %s725_s0 }
  0x19   :  { %p505_p10 = pnand %p503_p9, %p500_p8 }
  0x1b   :  { %508 = shalt.err (!%p505_p10)
}
  0x1c   :  { %s509_s1 = scalar_lea.vmem %s21_s8, 128  ;;  %p514_p12 = scmp.lt.s32.totalorder %s21_s8, %s21_s8 }
  0x1d   :  { %p510_p11 = scmp.ne.s32.totalorder %s21_s8, %s509_s1  ;;  %p515_p13 = scmp.lt.s32.totalorder %s509_s1, %s509_s1 }
  0x1f   :  { %p516_p0 = por %p515_p13, %p514_p12 }
  0x21   :  { %p517_p1 = pnand %p516_p0, %p510_p11 }
  0x23   :  { %520 = shalt.err (!%p517_p1)
}
  0x24   :  { %23 = dma.hbm_to_vmem [thread:$0]  %s725_s0, 128, %s21_s8, [#allocation3]  }
  0x25   :  { %s521_s22 = scalar_lea.hbm %s727_s2, 1024 }
  0x26   :  { %p522_p2 = scmp.ne.s32.totalorder %s727_s2, %s521_s22  ;;  %p525_p3 = scmp.lt.u32.totalorder %s521_s22, %s727_s2 }
  0x28   :  { %p527_p4 = pnand %p525_p3, %p522_p2 }
  0x2a   :  { %530 = shalt.err (!%p527_p4)
}
  0x2b   :  { %s531_s27 = scalar_lea.vmem %s42_s10, 1024  ;;  %p536_p6 = scmp.lt.s32.totalorder %s42_s10, %s42_s10 }
  0x2c   :  { %p532_p5 = scmp.ne.s32.totalorder %s42_s10, %s531_s27  ;;  %p537_p7 = scmp.lt.s32.totalorder %s531_s27, %s531_s27 }
  0x2e   :  { %p538_p8 = por %p537_p7, %p536_p6 }
  0x30   :  { %p539_p9 = pnand %p538_p8, %p532_p5 }
  0x32   :  { %542 = shalt.err (!%p539_p9)
}
  0x33   :  { %47 = dma.hbm_to_vmem [thread:$0]  %s727_s2, 1024, %s42_s10, [#allocation6], %s596_s28, %s596_s28, %s597_s29  }
  0x34   :  { %s600_s6 = smov [#allocation8]   ;;  %s543_s11 = scalar_lea.hbm %s728_s3, 1024 }
  0x35   :  { %s53_s7 = sshll.u32 %s600_s6, 4  ;;  %p544_p10 = scmp.ne.s32.totalorder %s728_s3, %s543_s11  ;;  %s54_s7 = int_to_ptr.vmem [resolvable:$true] %s53_s7 }
  0x36   :  { %p547_p11 = scmp.lt.u32.totalorder %s543_s11, %s728_s3 }
  0x38   :  { %p549_p12 = pnand %p547_p11, %p544_p10 }
  0x3a   :  { %552 = shalt.err (!%p549_p12)
}
  0x3b   :  { %s553_s16 = scalar_lea.vmem %s54_s7, 1024  ;;  %p558_p0 = scmp.lt.s32.totalorder %s54_s7, %s54_s7 }
  0x3c   :  { %p554_p13 = scmp.ne.s32.totalorder %s54_s7, %s553_s16  ;;  %p559_p1 = scmp.lt.s32.totalorder %s553_s16, %s553_s16 }
  0x3e   :  { %p560_p2 = por %p559_p1, %p558_p0 }
  0x40   :  { %p561_p3 = pnand %p560_p2, %p554_p13 }
  0x42   :  { %564 = shalt.err (!%p561_p3)
}
  0x43   :  { %59 = dma.hbm_to_vmem [thread:$0]  %s728_s3, 1024, %s54_s7, [#allocation9], %s596_s28, %s596_s28, %s597_s29  }
  0x44   :  { %587 = dma.done.wait [#allocation3], 128  }
  0x45   :  { %588 = vsyncadd [#allocation3], 4294967168 }
  0x46   :  { %589 = dma.done.wait [#allocation6], 1280  }
  0x47   :  { %590 = vsyncadd [#allocation6], 4294966016 }
  0x48   :  { %591 = dma.done.wait [#allocation9], 1024  }
  0x49   :  { %592 = vsyncadd [#allocation9], 4294966272  ;;  %v601_v0 = vmov 0.0|0.0   ;;  %vm602_vm0 = vmmov 0   ;;  %v603_v1 = vmov 0.0   ;;  %vm88_vm1 = vcmask 1043456  }
  0x4a   :  { %434 = vmatprep.subr.bf16.mxu0 %v601_v0  ;;  %438 = vmatprep.subr.bf16.mxu1 %v601_v0  ;;  %v78_v2 = vld [vmem:[#allocation5] sm:$0xff]  ;;  %v79_v3 = vld [vmem:[#allocation5 + $0x8] sm:$0xf]  ;;  %vm604_vm2 = vmmov 1   ;;  %v74_v5 = vld [vmem:[#allocation2] sm:$0xff]  ;;  %vm84_vm4 = vcmask 97280  }
  0x4b   :  { %393 = vmatprep.mubr.msk.f32.mxu0 %vm602_vm0, %v603_v1  ;;  %412 = vmatprep.mubr.msk.f32.mxu1 %vm602_vm0, %v603_v1  ;;  %vm436_vm3 = vmpackc.low %vm88_vm1, %vm604_vm2  ;;  %v435_v4 = vpack.c.bf16 %v79_v3, %v78_v2  ;;  %v167_v6 = vld [vmem:[#allocation7] sm:$0xff]  ;;  %v168_v7 = vld [vmem:[#allocation7 + $0x8] sm:$0xff]  ;;  %vm179_vm5 = vcmask 523264   ;;  %s605_s19 = smov [#allocation10]  }
  0x4c   :  { %v439_v8 = vpack.c.bf16 %v168_v7, %v167_v6  ;;  %v169_v9 = vld [vmem:[#allocation7 + $0x10] sm:$0xff]  ;;  %v170_v10 = vld [vmem:[#allocation7 + $0x18] sm:$0xff]  ;;  %v171_v12 = vld [vmem:[#allocation7 + $0x20] sm:$0xff]  ;;  %s350_s20 = sshll.u32 %s605_s19, 4  ;;  %s351_s20 = int_to_ptr.vmem [resolvable:$true] %s350_s20 }
  0x4d   :  { %437 = vmatpush3.bf16.msk.msra.mxu0 %vm436_vm3, %v435_v4  ;;  %v442_v11 = vpack.c.bf16 %v170_v10, %v169_v9  ;;  %v172_v13 = vld [vmem:[#allocation7 + $0x28] sm:$0xff]  ;;  %v173_v15 = vld [vmem:[#allocation7 + $0x30] sm:$0xff]  ;;  %v174_v16 = vld [vmem:[#allocation7 + $0x38] sm:$0xff]  ;;  %s565_s21 = scalar_lea.vmem %s351_s20, 128  ;;  %p570_p5 = scmp.lt.s32.totalorder %s351_s20, %s351_s20 }
  0x4e   :  { %450 = vmatprep.subr.bf16.mxu0 %v601_v0  ;;  %440 = vmatpush3.bf16.msra.mxu1 %v439_v8  ;;  %v445_v14 = vpack.c.bf16 %v172_v13, %v171_v12  ;;  %v448_v17 = vpack.c.bf16 %v174_v16, %v173_v15  ;;  %v361_v18 = vld [vmem:[%s729_s4] ss:$0 sm:$0xff]  ;;  %v258_v27 = vld [vmem:[#allocation8] sm:$0xff]  ;;  %v260_v30 = vld [vmem:[#allocation8 + $0x10] sm:$0xff]  ;;  %p566_p4 = scmp.ne.s32.totalorder %s351_s20, %s565_s21  ;;  %p571_p6 = scmp.lt.s32.totalorder %s565_s21, %s565_s21 }
  0x4f   :  { %441 = vmatprep.subr.bf16.mxu1 %v601_v0  ;;  %v259_v28 = vld [vmem:[#allocation8 + $0x8] sm:$0xff]  ;;  %v261_v31 = vld [vmem:[#allocation8 + $0x18] sm:$0xff]  ;;  %v262_v33 = vld [vmem:[#allocation8 + $0x20] sm:$0xff] }
  0x50   :  { %394 = vmatmul.mubr.msk.f32.vlgmr.msra.gmra.mrb[0].mxu0 %vm84_vm4, %v74_v5  ;;  %v451_v29 = vpack.c.bf16 %v259_v28, %v258_v27  ;;  %v454_v32 = vpack.c.bf16 %v261_v31, %v260_v30  ;;  %v263_v34 = vld [vmem:[#allocation8 + $0x28] sm:$0xff]  ;;  %v264_v36 = vld [vmem:[#allocation8 + $0x30] sm:$0xff]  ;;  %v265_v37 = vld [vmem:[#allocation8 + $0x38] sm:$0xff]  ;;  %p572_p7 = por %p571_p6, %p570_p5 }
  0x51   :  { %431 = vmatprep.mubr.msk.f32.mxu0 %vm602_vm0, %v603_v1  ;;  %v457_v35 = vpack.c.bf16 %v263_v34, %v262_v33  ;;  %v460_v38 = vpack.c.bf16 %v265_v37, %v264_v36  ;;  %v364_v39 = vld [vmem:[%s729_s4 + $0x1] ss:$0 sm:$0xff]  ;;  %v366_v48 = vld [vmem:[%s729_s4 + $0x2] ss:$0 sm:$0xff] }
  0x52   :  { %443 = vmatpush3.bf16.msra.mxu1 %v442_v11  ;;  %452 = vmatpush3.bf16.msra.mxu0 %v451_v29  ;;  %p573_p8 = pnand %p572_p7, %p566_p4 }
  0x53   :  { %444 = vmatprep.subr.bf16.mxu1 %v601_v0  ;;  %453 = vmatprep.subr.bf16.mxu0 %v601_v0 }
  0x56   :  { %446 = vmatpush3.bf16.msra.mxu1 %v445_v14  ;;  %455 = vmatpush3.bf16.msra.mxu0 %v454_v32 }
  0x57   :  { %447 = vmatprep.subr.bf16.mxu1 %v601_v0  ;;  %456 = vmatprep.subr.bf16.mxu0 %v601_v0 }
  0x5a   :  { %449 = vmatpush3.bf16.msra.mxu1 %v448_v17  ;;  %458 = vmatpush3.bf16.msra.mxu0 %v457_v35 }
  0x5b   :  { %459 = vmatprep.subr.bf16.mxu0 %v601_v0 }
  0x5e   :  { %461 = vmatpush3.bf16.msra.mxu0 %v460_v38 }
 0x123   :  { %v158_v19 = vpop.f32.mrb[0].mxu0 }
 0x124   :  { %v159_v20 = vadd.f32 %v361_v18, %v158_v19  ;;  %v395_v21 = vpop.f32.mrb[1].mxu0 }
 0x126   :  { %v163_v22 = vmul.f32 0.70710677, %v159_v20  ;;  %v162_v24 = vmul.f32 0.5, %v159_v20 }
 0x128   :  { %473 = verf.f32 %v163_v22 }
 0x132   :  { %v474_v23 = vpop.eup %473 }
 0x133   :  { %v165_v25 = vadd.f32 1.0, %v474_v23 }
 0x135   :  { %v166_v26 = vmul.f32 %v165_v25, %v162_v24 }
 0x137   :  { %413 = vmatmul.mubr.msk.f32.vlgmr.msra.gmra.mrb[0].mxu1 %vm179_vm5, %v166_v26 }
 0x20a   :  { %v249_v40 = vpop.f32.mrb[0].mxu1 }
 0x20b   :  { %v250_v41 = vadd.f32 %v364_v39, %v249_v40  ;;  %v414_v42 = vpop.f32.mrb[1].mxu1 }
 0x20d   :  { %v254_v43 = vmul.f32 0.70710677, %v250_v41  ;;  %v253_v45 = vmul.f32 0.5, %v250_v41 }
 0x20f   :  { %475 = verf.f32 %v254_v43 }
 0x219   :  { %v476_v44 = vpop.eup %475 }
 0x21a   :  { %v256_v46 = vadd.f32 1.0, %v476_v44 }
 0x21c   :  { %v257_v47 = vmul.f32 %v256_v46, %v253_v45 }
 0x21e   :  { %432 = vmatmul.mubr.msk.f32.vlgmr.msra.gmra.mrb[2].mxu0 %vm179_vm5, %v257_v47 }
 0x2f1   :  { %v339_v49 = vpop.f32.mrb[2].mxu0 }
 0x2f2   :  { %v340_v50 = vadd.f32 %v366_v48, %v339_v49  ;;  %v433_v51 = vpop.f32.mrb[3].mxu0 }
 0x2f4   :  { %343 = vst [vmem:[#allocation10] sm:$0xff] %v340_v50 }
 0x2f5   :  { %576 = shalt.err (!%p573_p8)
}
 0x2f6   :  { %s577_s24 = scalar_lea.hbm %s730_s5, 128 }
 0x2f7   :  { %p578_p9 = scmp.ne.s32.totalorder %s730_s5, %s577_s24  ;;  %p581_p10 = scmp.lt.u32.totalorder %s577_s24, %s730_s5 }
 0x2f9   :  { %p583_p11 = pnand %p581_p10, %p578_p9 }
 0x2fb   :  { %586 = shalt.err (!%p583_p11)
}
 0x2fc   :  { %353 = dma.vmem_to_hbm [thread:$0]  %s351_s20, 128, %s730_s5, [#allocation4]  }
 0x2fd   :  { %593 = dma.done.wait [#allocation4], 128  }
 0x2fe   :  { %594 = vsyncadd [#allocation4], 4294967168 }
 0x2ff   :  { %357 = vsyncpa [#allocation3], 1 }
 0x300   :  { %358 = vsyncpa [#allocation6], 1 }
 0x301   :  { %359 = vsyncpa [#allocation9], 1 }
 0x302   :  { %360 = vsyncpa [#allocation4], 1 }

</bundles_post_ra>
